<compile_context>
chip_gen: v6e
topology: v6e:2x2x1
jax: 0.10.0
libtpu: 0.0.40
codegen_flags: <defaults>
</compile_context>

<pallas_src>
import jax
import jax.numpy as jnp
from jax.experimental import pallas as pl
from jax.experimental.pallas import tpu as pltpu


def _make_fused_gcn_kernel(num_layers):
    """Build a kernel handling `num_layers` (weight, 2*bias) input pairs."""

    def kernel(*refs):
        adj_ref, x_ref = refs[0], refs[1]
        w_refs = refs[2:2 + 2 * num_layers:2]
        b2_refs = refs[3:2 + 2 * num_layers:2]
        out_ref, mask_ref = refs[2 + 2 * num_layers:]

        adj = adj_ref[0]                                  # [T, T], resident for all layers
        x = x_ref[0]                                      # [T, Din]

        # denom = adj.sum(2) + 1 ; pool_mask = (adj.sum(2) + adj.sum(1)) == 0
        row_sum = jnp.sum(adj, axis=1, keepdims=True)     # adj.sum(2) -> [T, 1]
        col_sum = jnp.sum(adj, axis=0, keepdims=True)     # adj.sum(1) -> [1, T]
        # exact reciprocal (divide -> multiply); approx=True is fine at looser tolerance
        inv_denom = pl.reciprocal(row_sum + 1.0, approx=False)     # [T, 1]
        total = jnp.transpose(row_sum) + col_sum                   # [1, T]
        mask_ref[...] = (total == 0.0).astype(jnp.int32)[None]     # [1, 1, T]

        for l in range(num_layers):
            w = w_refs[l][...]                            # [Din_l, H]
            b2 = b2_refs[l][...]                          # [1, H]  (= 2 * bias)
            # W(Ax) + W(x) == adj @ (x @ W) + x @ W + 2*b   (Linear applied twice)
            xw = jnp.dot(x, w, preferred_element_type=jnp.float32)        # [T, H]
            h = jnp.dot(adj, xw, preferred_element_type=jnp.float32) + xw + b2
            x = jnp.maximum(h * inv_denom, 0.0)
            # TODO(synk): inter-layer nn.Dropout treated as identity (inference mode).

        out_ref[...] = x[None].astype(out_ref.dtype)

    return kernel


def gcn_forward(gcn_inputs, adj, weights, biases):
    """weights[l]: [Din_l, H] (already transposed vs torch nn.Linear), biases[l]: [H]."""
    B, T, in_dim = gcn_inputs.shape
    num_layers = len(weights)
    hidden_dim = weights[-1].shape[1]
    in_dtype = gcn_inputs.dtype

    # Hoisted casts: done exactly once, reused by the single fused kernel.
    adj_f32 = adj.astype(jnp.float32)
    x_f32 = gcn_inputs.astype(jnp.float32)

    wb_args, wb_specs = [], []
    flops = 0
    for w, b in zip(weights, biases):
        din, h = w.shape
        wb_args.append(w.astype(jnp.float32))
        wb_args.append((2.0 * b).reshape(1, h).astype(jnp.float32))
        wb_specs.append(pl.BlockSpec((din, h), lambda i: (0, 0)))
        wb_specs.append(pl.BlockSpec((1, h), lambda i: (0, 0)))
        flops += 2 * B * T * (din * h + T * h)

    weight_bytes = 4 * sum(int(a.size) for a in wb_args)
    bytes_accessed = int(4 * (adj_f32.size + x_f32.size + B * T * hidden_dim + B * T)
                         + weight_bytes)

    # VMEM: double-buffered per-batch adj/x/out blocks + resident weights + slack.
    vmem_needed = (2 * 4 * (T * T + T * in_dim + T * hidden_dim + T)
                   + weight_bytes + (1 << 20))
    vmem_limit = int(min(max(vmem_needed, 32 << 20), 64 << 20))   # stay within v7x's 64 MiB

    out_f32, mask_i32 = pl.pallas_call(
        _make_fused_gcn_kernel(num_layers),
        grid=(B,),
        in_specs=[
            pl.BlockSpec((1, T, T), lambda i: (i, 0, 0)),
            pl.BlockSpec((1, T, in_dim), lambda i: (i, 0, 0)),
            *wb_specs,
        ],
        out_specs=(
            pl.BlockSpec((1, T, hidden_dim), lambda i: (i, 0, 0)),
            pl.BlockSpec((1, 1, T), lambda i: (i, 0, 0)),
        ),
        out_shape=(
            jax.ShapeDtypeStruct((B, T, hidden_dim), jnp.float32),
            jax.ShapeDtypeStruct((B, 1, T), jnp.int32),
        ),
        compiler_params=pltpu.CompilerParams(
            dimension_semantics=("parallel",),
            vmem_limit_bytes=vmem_limit,
        ),
        cost_estimate=pl.CostEstimate(
            flops=int(flops),
            transcendentals=int(B * T),
            bytes_accessed=bytes_accessed,
        ),
    )(adj_f32, x_f32, *wb_args)

    pool_mask = mask_i32[:, 0, :].astype(jnp.bool_)      # [B, T] bool
    return out_f32.astype(in_dtype), pool_mask


def _reference(gcn_inputs, adj, weights, biases):
    """Pure-JAX reference mirroring the PyTorch forward (eval mode)."""
    denom = jnp.sum(adj, axis=2, keepdims=True) + 1.0
    pool_mask = (jnp.sum(adj, axis=2) + jnp.sum(adj, axis=1)) == 0
    x = gcn_inputs
    for w, b in zip(weights, biases):
        ax = jnp.einsum("bij,bjd->bid", adj, x)
        axw = ax @ w + b + (x @ w + b)
        x = jax.nn.relu(axw / denom)
    return x, pool_mask


if __name__ == "__main__":
    key = jax.random.PRNGKey(0)
    B, T, in_dim, hidden_dim, num_layers = 2, 8, 32, 32, 2

    keys = jax.random.split(key, 2 + 2 * num_layers)
    gcn_inputs = jax.random.normal(keys[0], (B, T, in_dim), dtype=jnp.float32)
    adj = (jax.random.uniform(keys[1], (B, T, T)) > 0.6).astype(jnp.float32)
    # make the last token isolated so pool_mask has some True entries
    adj = adj.at[:, T - 1, :].set(0.0)
    adj = adj.at[:, :, T - 1].set(0.0)

    weights, biases = [], []
    for l in range(num_layers):
        din = in_dim if l == 0 else hidden_dim
        w = 0.1 * jax.random.normal(keys[2 + 2 * l], (din, hidden_dim), dtype=jnp.float32)
        b = 0.1 * jax.random.normal(keys[3 + 2 * l], (hidden_dim,), dtype=jnp.float32)
        weights.append(w)
        biases.append(b)

    out, pool_mask = gcn_forward(gcn_inputs, adj, weights, biases)
    jax.block_until_ready((out, pool_mask))

    ref_out, ref_mask = _reference(gcn_inputs, adj, weights, biases)
    assert out.shape == (B, T, hidden_dim) and pool_mask.shape == (B, T)
    assert jnp.allclose(out, ref_out, atol=1e-3, rtol=1e-3)
    assert bool(jnp.all(pool_mask == ref_mask))

    print("KERNEL_OK")
</pallas_src>

<mosaic_0001>
module attributes {stable_mosaic.version = 11 : i64} {
  func.func @kernel(%arg0: i32, %arg1: memref<1x8x8xf32, #tpu.memory_space<vmem>>, %arg2: memref<1x8x32xf32, #tpu.memory_space<vmem>>, %arg3: memref<32x32xf32, #tpu.memory_space<vmem>>, %arg4: memref<1x32xf32, #tpu.memory_space<vmem>>, %arg5: memref<32x32xf32, #tpu.memory_space<vmem>>, %arg6: memref<1x32xf32, #tpu.memory_space<vmem>>, %arg7: memref<1x8x32xf32, #tpu.memory_space<vmem>>, %arg8: memref<1x1x8xi32, #tpu.memory_space<vmem>>) attributes {dimension_semantics = [#tpu.dimension_semantics<parallel>], iteration_bounds = array<i64: 2>, scalar_prefetch = 0 : i64, scratch_operands = 0 : i64, tpu.core_type = #tpu.core_type<tc>, window_params = [{transform_indices = @transform_0, window_bounds = array<i64: 1, 8, 8>}, {transform_indices = @transform_1, window_bounds = array<i64: 1, 8, 32>}, {pipeline_mode = #tpu.pipeline_mode<synchronous>, transform_indices = @transform_2, window_bounds = array<i64: 32, 32>}, {pipeline_mode = #tpu.pipeline_mode<synchronous>, transform_indices = @transform_3, window_bounds = array<i64: 1, 32>}, {pipeline_mode = #tpu.pipeline_mode<synchronous>, transform_indices = @transform_4, window_bounds = array<i64: 32, 32>}, {pipeline_mode = #tpu.pipeline_mode<synchronous>, transform_indices = @transform_5, window_bounds = array<i64: 1, 32>}, {transform_indices = @transform_6, window_bounds = array<i64: 1, 8, 32>}, {transform_indices = @transform_7, window_bounds = array<i64: 1, 1, 8>}]} {
    %c0 = arith.constant 0 : index
    %c0_0 = arith.constant 0 : index
    %c0_1 = arith.constant 0 : index
    %0 = vector.load %arg1[%c0, %c0_0, %c0_1] : memref<1x8x8xf32, #tpu.memory_space<vmem>>, vector<1x8x8xf32>
    %1 = vector.shape_cast %0 : vector<1x8x8xf32> to vector<8x8xf32>
    %c0_2 = arith.constant 0 : index
    %c0_3 = arith.constant 0 : index
    %c0_4 = arith.constant 0 : index
    %2 = vector.load %arg2[%c0_2, %c0_3, %c0_4] : memref<1x8x32xf32, #tpu.memory_space<vmem>>, vector<1x8x32xf32>
    %3 = vector.shape_cast %2 : vector<1x8x32xf32> to vector<8x32xf32>
    %cst = arith.constant dense<0.000000e+00> : vector<8xf32>
    %4 = vector.multi_reduction <add>, %1, %cst [1] : vector<8x8xf32> to vector<8xf32>
    %5 = vector.shape_cast %4 : vector<8xf32> to vector<8x1xf32>
    %cst_5 = arith.constant dense<0.000000e+00> : vector<8xf32>
    %6 = vector.multi_reduction <add>, %1, %cst_5 [0] : vector<8x8xf32> to vector<8xf32>
    %7 = vector.shape_cast %6 : vector<8xf32> to vector<1x8xf32>
    %cst_6 = arith.constant 1.000000e+00 : f32
    %8 = vector.broadcast %cst_6 : f32 to vector<8x1xf32>
    %9 = arith.addf %5, %8 : vector<8x1xf32>
    %10 = tpu.reciprocal %9 : vector<8x1xf32> -> vector<8x1xf32>
    %11 = tpu.transpose %5, [1, 0] : vector<8x1xf32> -> vector<1x8xf32>
    %12 = arith.addf %11, %7 : vector<1x8xf32>
    %cst_7 = arith.constant 0.000000e+00 : f32
    %13 = vector.broadcast %cst_7 : f32 to vector<1x8xf32>
    %14 = arith.cmpf oeq, %12, %13 : vector<1x8xf32>
    %15 = arith.extui %14 : vector<1x8xi1> to vector<1x8xi32>
    %16 = vector.shape_cast %15 : vector<1x8xi32> to vector<1x1x8xi32>
    %c0_8 = arith.constant 0 : index
    %c0_9 = arith.constant 0 : index
    %c0_10 = arith.constant 0 : index
    %17 = vector.load %arg8[%c0_8, %c0_9, %c0_10] : memref<1x1x8xi32, #tpu.memory_space<vmem>>, vector<1x1x8xi32>
    tpu.vector_store %arg8[%c0_8, %c0_9, %c0_10], %16 {strides = array<i32>} : memref<1x1x8xi32, #tpu.memory_space<vmem>>, vector<1x1x8xi32>,
    %c0_11 = arith.constant 0 : index
    %c0_12 = arith.constant 0 : index
    %18 = vector.load %arg3[%c0_11, %c0_12] : memref<32x32xf32, #tpu.memory_space<vmem>>, vector<32x32xf32>
    %c0_13 = arith.constant 0 : index
    %c0_14 = arith.constant 0 : index
    %19 = vector.load %arg4[%c0_13, %c0_14] : memref<1x32xf32, #tpu.memory_space<vmem>>, vector<1x32xf32>
    %cst_15 = arith.constant dense<0.000000e+00> : vector<8x32xf32>
    %20 = tpu.matmul %3, %18, %cst_15 {dimension_numbers = #tpu.dot_dimension_numbers<[1], [0], [0], [1], [0, 0, 1, 1], [], []>} : vector<8x32xf32>, vector<32x32xf32>, vector<8x32xf32> -> vector<8x32xf32>
    %cst_16 = arith.constant dense<0.000000e+00> : vector<8x32xf32>
    %21 = tpu.matmul %1, %20, %cst_16 {dimension_numbers = #tpu.dot_dimension_numbers<[1], [0], [0], [1], [0, 0, 1, 1], [], []>} : vector<8x8xf32>, vector<8x32xf32>, vector<8x32xf32> -> vector<8x32xf32>
    %22 = arith.addf %21, %20 : vector<8x32xf32>
    %23 = vector.broadcast %19 : vector<1x32xf32> to vector<8x32xf32>
    %24 = arith.addf %22, %23 : vector<8x32xf32>
    %25 = vector.broadcast %10 : vector<8x1xf32> to vector<8x32xf32>
    %26 = arith.mulf %24, %25 : vector<8x32xf32>
    %cst_17 = arith.constant 0.000000e+00 : f32
    %27 = vector.broadcast %cst_17 : f32 to vector<8x32xf32>
    %28 = arith.maximumf %26, %27 : vector<8x32xf32>
    %c0_18 = arith.constant 0 : index
    %c0_19 = arith.constant 0 : index
    %29 = vector.load %arg5[%c0_18, %c0_19] : memref<32x32xf32, #tpu.memory_space<vmem>>, vector<32x32xf32>
    %c0_20 = arith.constant 0 : index
    %c0_21 = arith.constant 0 : index
    %30 = vector.load %arg6[%c0_20, %c0_21] : memref<1x32xf32, #tpu.memory_space<vmem>>, vector<1x32xf32>
    %cst_22 = arith.constant dense<0.000000e+00> : vector<8x32xf32>
    %31 = tpu.matmul %28, %29, %cst_22 {dimension_numbers = #tpu.dot_dimension_numbers<[1], [0], [0], [1], [0, 0, 1, 1], [], []>} : vector<8x32xf32>, vector<32x32xf32>, vector<8x32xf32> -> vector<8x32xf32>
    %cst_23 = arith.constant dense<0.000000e+00> : vector<8x32xf32>
    %32 = tpu.matmul %1, %31, %cst_23 {dimension_numbers = #tpu.dot_dimension_numbers<[1], [0], [0], [1], [0, 0, 1, 1], [], []>} : vector<8x8xf32>, vector<8x32xf32>, vector<8x32xf32> -> vector<8x32xf32>
    %33 = arith.addf %32, %31 : vector<8x32xf32>
    %34 = vector.broadcast %30 : vector<1x32xf32> to vector<8x32xf32>
    %35 = arith.addf %33, %34 : vector<8x32xf32>
    %36 = vector.broadcast %10 : vector<8x1xf32> to vector<8x32xf32>
    %37 = arith.mulf %35, %36 : vector<8x32xf32>
    %cst_24 = arith.constant 0.000000e+00 : f32
    %38 = vector.broadcast %cst_24 : f32 to vector<8x32xf32>
    %39 = arith.maximumf %37, %38 : vector<8x32xf32>
    %40 = vector.shape_cast %39 : vector<8x32xf32> to vector<1x8x32xf32>
    %c0_25 = arith.constant 0 : index
    %c0_26 = arith.constant 0 : index
    %c0_27 = arith.constant 0 : index
    %41 = vector.load %arg7[%c0_25, %c0_26, %c0_27] : memref<1x8x32xf32, #tpu.memory_space<vmem>>, vector<1x8x32xf32>
    tpu.vector_store %arg7[%c0_25, %c0_26, %c0_27], %40 {strides = array<i32>} : memref<1x8x32xf32, #tpu.memory_space<vmem>>, vector<1x8x32xf32>,
    return
  }
  func.func @transform_0(%arg0: i32) -> (i32, i32, i32) {
    %c0_i32 = arith.constant 0 : i32
    %c0_i32_0 = arith.constant 0 : i32
    %c0_i32_1 = arith.constant 0 : i32
    return %arg0, %c0_i32, %c0_i32_0 : i32, i32, i32
  }
  func.func @transform_1(%arg0: i32) -> (i32, i32, i32) {
    %c0_i32 = arith.constant 0 : i32
    %c0_i32_0 = arith.constant 0 : i32
    %c0_i32_1 = arith.constant 0 : i32
    return %arg0, %c0_i32, %c0_i32_0 : i32, i32, i32
  }
  func.func @transform_2(%arg0: i32) -> (i32, i32) {
    %c0_i32 = arith.constant 0 : i32
    %c0_i32_0 = arith.constant 0 : i32
    %c0_i32_1 = arith.constant 0 : i32
    return %c0_i32, %c0_i32_0 : i32, i32
  }
  func.func @transform_3(%arg0: i32) -> (i32, i32) {
    %c0_i32 = arith.constant 0 : i32
    %c0_i32_0 = arith.constant 0 : i32
    %c0_i32_1 = arith.constant 0 : i32
    return %c0_i32, %c0_i32_0 : i32, i32
  }
  func.func @transform_4(%arg0: i32) -> (i32, i32) {
    %c0_i32 = arith.constant 0 : i32
    %c0_i32_0 = arith.constant 0 : i32
    %c0_i32_1 = arith.constant 0 : i32
    return %c0_i32, %c0_i32_0 : i32, i32
  }
  func.func @transform_5(%arg0: i32) -> (i32, i32) {
    %c0_i32 = arith.constant 0 : i32
    %c0_i32_0 = arith.constant 0 : i32
    %c0_i32_1 = arith.constant 0 : i32
    return %c0_i32, %c0_i32_0 : i32, i32
  }
  func.func @transform_6(%arg0: i32) -> (i32, i32, i32) {
    %c0_i32 = arith.constant 0 : i32
    %c0_i32_0 = arith.constant 0 : i32
    %c0_i32_1 = arith.constant 0 : i32
    return %arg0, %c0_i32, %c0_i32_0 : i32, i32, i32
  }
  func.func @transform_7(%arg0: i32) -> (i32, i32, i32) {
    %c0_i32 = arith.constant 0 : i32
    %c0_i32_0 = arith.constant 0 : i32
    %c0_i32_1 = arith.constant 0 : i32
    return %arg0, %c0_i32, %c0_i32_0 : i32, i32, i32
  }
}

</mosaic_0001>

<bundles_post_ra>
// kernel: tpu_custom_call.1
= control target key start
LH: loop header
LB: loop body
LE: loop exit
PB: predicated region body
PF: predicated region fallthrough
CT: control target
= control target key end

     0   :  { %s1591_s0 = inlined_call_operand.hbm [shape: f32[2,8,8], index: 0, kind: input, shape index: {}]   ;;  %s1592_s1 = inlined_call_operand.hbm [shape: f32[2,8,32], index: 1, kind: input, shape index: {}]   ;;  %s1593_s2 = inlined_call_operand.hbm [shape: f32[32,32], index: 2, kind: input, shape index: {}]   ;;  %s1594_s3 = inlined_call_operand.vmem [shape: f32[1,32], index: 3, kind: input, shape index: {}]   ;;  %s1595_s4 = inlined_call_operand.hbm [shape: f32[32,32], index: 4, kind: input, shape index: {}]   ;;  %s1596_s5 = inlined_call_operand.vmem [shape: f32[1,32], index: 5, kind: input, shape index: {}]   ;;  %s1597_s6 = inlined_call_operand.hbm [shape: f32[2,8,32], index: 6, kind: output, shape index: {0}]   ;;  %s1598_s7 = inlined_call_operand.hbm [shape: s32[2,1,8], index: 7, kind: output, shape index: {1}]  }
   0x1   :  { %1604 = sst [smem:[#allocation21_spill]] %s1593_s2 }
   0x2   :  { %1605 = sst [smem:[#allocation22_spill]] %s1595_s4 }
   0x3   :  { %13 = vsyncpa [#allocation3], 0 }
   0x4   :  { %15 = vsyncpa [#allocation3 + $0x1], 0 }
   0x5   :  { %16 = vsyncpa [#allocation6], 0 }
   0x6   :  { %18 = vsyncpa [#allocation6 + $0x1], 0 }
   0x7   :  { %19 = vsyncpa [#allocation9], 0 }
   0x8   :  { %20 = vsyncpa [#allocation4], 0 }
   0x9   :  { %22 = vsyncpa [#allocation4 + $0x1], 0 }
   0xa   :  { %23 = vsyncpa [#allocation12], 0 }
   0xb   :  { %25 = vsyncpa [#allocation12 + $0x1], 0  ;;  %s1334_s24 = smov 0   ;;  %s1336_s25 = smov 0  }
   0xc   :  { %s1338_s26 = smov 0   ;;  %s1340_s27 = smov 0  }
   0xd LB: > { %1606 = sst [smem:[#allocation19_spill]] %s1277_s26  ;;  %s1355_s28 = sadd.s32 4294967295, %s1281_s27   ;;  %s1281_s27 = sphi %s1340_s27, %s1630_s27   ;;  %s1277_s26 = sphi %s1338_s26, %s1627_s26   ;;  %s1273_s25 = sphi %s1336_s25, %s1629_s25   ;;  %s1269_s24 = sphi %s1334_s24, %s1628_s24  }
   0xe   : > { %s911_s29 = sadd.s32 4294967294, %s1281_s27   ;;  %p51_p0 = scmp.ne.s32.totalorder %s1273_s25, %s1269_s24 }
   0xf   : > { %p1599_p1 = scmp.eq.s32.totalorder %s1355_s28, 0  ;;  %p191_p3 = scmp.eq.s32.totalorder %s911_s29, 1 }
  0x10   : > { %p912_p5 = scmp.ge.s32.totalorder %s1281_s27, 1  ;;  %p224_p7 = scmp.lt.s32.totalorder %s1281_s27, 3 }
  0x11   : > { %p1364_p4 = por %p1599_p1, %p51_p0  ;;  %p1369_p6 = por %p191_p3, %p51_p0 }
  0x12   : > { %p1374_p8 = pnand %p912_p5, %p224_p7  ;;  %s1283_s10 = smov [#allocation7]  }
  0x13   : > { %s1607_s30 = scalar_select %p1364_p4, 1, 0 }
  0x14   : > { %s1608_s8 = scalar_select %p1369_p6, 1, 0 }
  0x15   : > { %s1609_s9 = scalar_select %p1374_p8, 1, 0 }
  0x16   : > { %s236_s11 = sshll.u32 %s1283_s10, 4  ;;  %p999_p9 = pneg %p1374_p8  ;;  %s237_s11 = int_to_ptr.vmem [resolvable:$true] %s236_s11 }
  0x17   : > { %s1284_s13 = smov [#allocation8]   ;;  %s1078_s15 = scalar_lea.vmem %s237_s11, 512 }
  0x18   : > { %p1383_p11 = pnand %p999_p9, %p1599_p1  ;;  %s252_s14 = sshll.u32 %s1284_s13, 4  ;;  %s253_s14 = int_to_ptr.vmem [resolvable:$true] %s252_s14 }
  0x19   : > { %p1079_p13 = scmp.ne.s32.totalorder %s237_s11, %s1078_s15  ;;  %p1086_p5 = scmp.lt.s32.totalorder %s237_s11, %s237_s11 }
  0x1a   : > { %p1069_p12 = pneg %p1383_p11  ;;  %p1087_p7 = scmp.lt.s32.totalorder %s1078_s15, %s1078_s15 }
  0x1c   : > { %p1081_p0 = pnand %p1079_p13, %p1069_p12  ;;  %p1088_p10 = por %p1087_p7, %p1086_p5 }
  0x1e   : > { %p1082_p3 = pneg %p1081_p0 }
  0x20   : > { %p1089_p9 = pnand %p1088_p10, %p1082_p3 }
  0x22   : > { %1092 = shalt.err (!%p1089_p9)
}
  0x23   : > { %s1285_s16 = smov 128   ;;  %s1286_s17 = smov 8  }
  0x24   : > { %s1611_s2 = sld [smem:[#allocation21_spill]]  ;;  %s1104_s20 = scalar_lea.vmem %s253_s14, 512 }
  0x25   : > { %p1105_p1 = scmp.ne.s32.totalorder %s253_s14, %s1104_s20  ;;  %p1112_p2 = scmp.lt.s32.totalorder %s253_s14, %s253_s14 }
  0x26   : > { %p1113_p6 = scmp.lt.s32.totalorder %s1104_s20, %s1104_s20 }
  0x27   : > { %p1107_p13 = pnand %p1105_p1, %p1069_p12 }
  0x28   : > { %p1114_p5 = por %p1113_p6, %p1112_p2 }
  0x29   : > { %p1108_p0 = pneg %p1107_p13 }
  0x2a   : > { %1002 = dma.hbm_to_vmem [thread:$0]  (!%p1383_p11), %s1611_s2, 512, %s237_s11, [#allocation6], %s1285_s16, %s1285_s16, %s1286_s17  }
  0x2b   : > { %p1115_p10 = pnand %p1114_p5, %p1108_p0 }
  0x2d   : > { %1118 = shalt.err (!%p1115_p10)
}
  0x2e   : > { %s1612_s4 = sld [smem:[#allocation22_spill]]  ;;  %s1406_s23 = sadd.s32 1, %s1281_s27  }
  0x2f   : > { %s38_s29 = sadd.s32 1, %s1277_s26  ;;  %s35_s10 = ssub.s32 %s1281_s27, %s1406_s23 }
  0x30   : > { %p45_p1 = scmp.ne.s32.totalorder %s1277_s26, %s1273_s25  ;;  %p36_p2 = scmp.eq.s32.totalorder %s35_s10, 0 }
  0x31   : > { %p46_p6 = scmp.eq.s32.totalorder %s1281_s27, 0  ;;  %p1613_p12 = scmp.eq.s32.totalorder %s1355_s28, 1 }
  0x32   : > { %p1022_p7 = scmp.lt.s32.totalorder %s1281_s27, 2  ;;  %s269_s13 = sand.u32 1, %s1277_s26  }
  0x33   : > { %p1416_p3 = por %p1613_p12, %p45_p1  ;;  %p47_p9 = por %p46_p6, %p45_p1 }
  0x34   : > { %1005 = dma.hbm_to_vmem [thread:$0]  (!%p1383_p11), %s1612_s4, 512, %s253_s14, [#allocation9], %s1285_s16, %s1285_s16, %s1286_s17  }
  0x35   : > { %s1614_s11 = scalar_select %p1416_p3, 1, 0 }
  0x36   : > { %s1422_s12 = scalar_select %p36_p2, %s1277_s26, %s38_s29  }
  0x37   : > { %s1425_s14 = sshll.u32 %s269_s13, 3  ;;  %s917_s15 = sshll.u32 %s1281_s27, 7 }
  0x38   : > { %1615 = sst [smem:[#allocation20_spill]] %s1422_s12  ;;  %s1431_s18 = scalar_lea.hbm %s1591_s0, %s917_s15 }
  0x39   : > { %s273_s19 = scalar_lea.vmem [#allocation2], %s1425_s14  ;;  %p1436_p11 = pnand %p1022_p7, %p47_p9 }
  0x3a   : > { %s280_s20 = sshll.u32 %s273_s19, 4  ;;  %s1443_s10 = scalar_lea.hbm %s1592_s1, %s917_s15  ;;  %s1434_s20 = int_to_ptr.vmem [resolvable:$true] %s280_s20 }
  0x3b   : > { %s287_s16 = sand.u32 1, %s1281_s27   ;;  %s270_s17 = scalar_lea.sflag [#allocation3], %s269_s13 }
  0x3c   : > { %s1119_s2 = scalar_lea.hbm %s1431_s18, 128  ;;  %p1121_p0 = pneg %p1436_p11 }
  0x3d   : > { %p1120_p13 = scmp.ne.s32.totalorder %s1431_s18, %s1119_s2  ;;  %s1124_s12 = scalar_lea.hbm %s1591_s0, 256 }
  0x3e   : > { %p1125_p1 = scmp.lt.s32.totalorder %s1431_s18, %s1591_s0  ;;  %p1126_p2 = scmp.lt.s32.totalorder %s1124_s12, %s1119_s2 }
  0x3f   : > { %p1122_p5 = pnand %p1121_p0, %p1120_p13 }
  0x40   : > { %p1127_p6 = por %p1126_p2, %p1125_p1 }
  0x41   : > { %p1123_p10 = pneg %p1122_p5 }
  0x43   : > { %p1128_p12 = pnand %p1127_p6, %p1123_p10 }
  0x45   : > { %1131 = shalt.err (!%p1128_p12)
}
  0x46   : > { %s1132_s13 = scalar_lea.vmem %s1434_s20, 128  ;;  %s1287_s4 = smov [#allocation2]  }
  0x47   : > { %p1133_p7 = scmp.ne.s32.totalorder %s1434_s20, %s1132_s13  ;;  %s1137_s15 = sshll.u32 %s1287_s4, 4  ;;  %s1138_s15 = int_to_ptr.vmem [resolvable:$false] %s1137_s15 }
  0x48   : > { %s1139_s29 = scalar_lea.vmem %s1138_s15, 256  ;;  %p1140_p5 = scmp.lt.s32.totalorder %s1434_s20, %s1138_s15 }
  0x49   : > { %p1135_p9 = pnand %p1133_p7, %p1121_p0  ;;  %p1141_p3 = scmp.lt.s32.totalorder %s1139_s29, %s1132_s13 }
  0x4b   : > { %p1136_p13 = pneg %p1135_p9  ;;  %p1142_p4 = por %p1141_p3, %p1140_p5 }
  0x4d   : > { %p1143_p1 = pnand %p1142_p4, %p1136_p13 }
  0x4f   : > { %1146 = shalt.err (!%p1143_p1)
}
  0x50   : > { %1009 = dma.hbm_to_vmem [thread:$0]  (!%p1436_p11), %s1431_s18, 128, %s1434_s20, %s270_s17  }
  0x51   : > { %s291_s2 = scalar_lea.vmem [#allocation5], %s1425_s14  ;;  %s288_s12 = scalar_lea.sflag [#allocation6], %s287_s16 }
  0x52   : > { %s298_s26 = sshll.u32 %s291_s2, 4  ;;  %s1147_s19 = scalar_lea.hbm %s1443_s10, 128  ;;  %s299_s26 = int_to_ptr.vmem [resolvable:$true] %s298_s26 }
  0x53   : > { %p1148_p3 = scmp.ne.s32.totalorder %s1443_s10, %s1147_s19  ;;  %s1152_s4 = scalar_lea.hbm %s1592_s1, 256 }
  0x54   : > { %p1153_p2 = scmp.lt.s32.totalorder %s1443_s10, %s1592_s1  ;;  %p1154_p6 = scmp.lt.s32.totalorder %s1152_s4, %s1147_s19 }
  0x55   : > { %p1150_p4 = pnand %p1148_p3, %p1121_p0 }
  0x56   : > { %p1155_p12 = por %p1154_p6, %p1153_p2 }
  0x57   : > { %p1151_p10 = pneg %p1150_p4 }
  0x59   : > { %p1156_p7 = pnand %p1155_p12, %p1151_p10 }
  0x5b   : > { %1159 = shalt.err (!%p1156_p7)
}
  0x5c   : > { %s1160_s14 = scalar_lea.vmem %s299_s26, 128  ;;  %s1288_s18 = smov [#allocation5]  }
  0x5d   : > { %p1161_p9 = scmp.ne.s32.totalorder %s299_s26, %s1160_s14  ;;  %s1165_s20 = sshll.u32 %s1288_s18, 4  ;;  %s1166_s20 = int_to_ptr.vmem [resolvable:$false] %s1165_s20 }
  0x5e   : > { %s1167_s16 = scalar_lea.vmem %s1166_s20, 256  ;;  %p1168_p1 = scmp.lt.s32.totalorder %s299_s26, %s1166_s20 }
  0x5f   : > { %p1163_p13 = pnand %p1161_p9, %p1121_p0  ;;  %p1169_p3 = scmp.lt.s32.totalorder %s1167_s16, %s1160_s14 }
  0x61   : > { %p1164_p5 = pneg %p1163_p13  ;;  %p1170_p4 = por %p1169_p3, %p1168_p1 }
  0x63   : > { %p1171_p8 = pnand %p1170_p4, %p1164_p5 }
  0x65   : > { %1174 = shalt.err (!%p1171_p8)
}
  0x66   : > { %1012 = dma.hbm_to_vmem [thread:$0]  (!%p1436_p11), %s1443_s10, 128, %s299_s26, %s288_s12  }
  0x67   : > { %p1617_p10 = scmp.ne.s32.totalorder %s1609_s9, 0 }
  0x68   : > { %s1494_s17 = sand.u32 (!%p1617_p10), 1, %s1273_s25   ;;  %p1618_p0 = scmp.ne.s32.totalorder (!%p1617_p10), %s1607_s30, 0 }
  0x69   : > { %307 = sbr.rel (%p1617_p10) target bundleno = 933 (0x3a5), region = 44  ;;  %s1497_s2 = sshll.u32 (!%p1617_p10), %s1494_s17, 3 }
  0x6a   : > { %s310_s19 = scalar_lea.sflag (!%p1617_p10), [#allocation3], %s1494_s17  ;;  %s313_s22 = scalar_lea.vmem (!%p1617_p10), [#allocation2], %s1497_s2 }
  0x6e   : > { %1244 = dma.done.wait (%p1618_p0), %s310_s19, 128  }
  0x6f   : > { %1246 = vsyncadd (%p1618_p0), %s310_s19, 4294967168  ;;  %s318_s9 = sand.u32 1, %s1355_s28   ;;  %s322_s10 = scalar_lea.vmem [#allocation5], %s1497_s2 }
  0x70   : > { %s319_s21 = scalar_lea.sflag [#allocation6], %s318_s9 }
  0x71   : > { %1248 = dma.done.wait (%p1618_p0), %s319_s21, 128  }
  0x72   : > { %1250 = vsyncadd (%p1618_p0), %s319_s21, 4294967168  ;;  %p1619_p8 = scmp.eq.s32.totalorder %s1355_s28, 0 }
  0x74   : > { %1252 = dma.done.wait (%p1619_p8), [#allocation6], 512   ;;  %p1620_p11 = pmov %p1619_p8 }
  0x75   : > { %p1621_p2 = pmov %p1619_p8 }
  0x76   : > { %1254 = vsyncadd (%p1620_p11), [#allocation6], 4294966784 }
  0x77   : > { %1256 = dma.done.wait (%p1621_p2), [#allocation9], 512   ;;  %p1622_p6 = pmov %p1621_p2 }
  0x78   : > { %v1289_v0 = vmov 0.0   ;;  %vm1290_vm0 = vmmov 0   ;;  %v424_v1 = vld [vmem:[#allocation7 + $0x18] sm:$0xff]  ;;  %v423_v2 = vld [vmem:[#allocation7 + $0x10] sm:$0xff]  ;;  %v422_v3 = vld [vmem:[#allocation7 + $0x8] sm:$0xff]  ;;  %vm426_vm1 = vcmask 261120  }
  0x79   : > { %1258 = vsyncadd (%p1622_p6), [#allocation9], 4294966784  ;;  %951 = vmatprep.subr.mxu0 %v1289_v0  ;;  %959 = vmatprep.mubr.msk.f32.mxu0 %vm1290_vm0, %v1289_v0  ;;  %v421_v4 = vld [vmem:[#allocation7] sm:$0xff]  ;;  %v371_v5 = vld [vmem:[%s322_s10] sm:$0xff]  ;;  %vm372_vm2 = vcmask 64512   ;;  %v1291_v34 = vmov 0  }
  0x7a   : > { %962 = vmatprep.subr.mxu1 %v1289_v0  ;;  %964 = vmatprep.mubr.msk.f32.mxu1 %vm1290_vm0, %v1289_v0  ;;  %v370_v6 = vld [vmem:[%s313_s22] sm:$0xff]  ;;  %v585_v11 = vld [vmem:[#allocation8 + $0x18] sm:$0xff]  ;;  %v584_v12 = vld [vmem:[#allocation8 + $0x10] sm:$0xff]  ;;  %vm419_vm4 = vcmask 57344   ;;  %s369_s12 = scalar_lea.vmem [#allocation11], %s1494_s17  ;;  %s934_s13 = sshll.u32 %s1355_s28, 4 }
  0x7b   : > { %952 = vmatpush3.msra.mxu0 %v424_v1  ;;  %v373_v7 = vsel %vm372_vm2, %v370_v6, 0.0  ;;  %v583_v13 = vld [vmem:[#allocation8 + $0x8] sm:$0xff]  ;;  %v582_v14 = vld [vmem:[#allocation8] sm:$0xff]  ;;  %s771_s4 = sshll.u32 %s369_s12, 4  ;;  %s769_s14 = scalar_lea.hbm %s1598_s7, %s934_s13  ;;  %s772_s4 = int_to_ptr.vmem [resolvable:$true] %s771_s4 }
  0x7c   : > { %953 = vmatprep.subr.mxu0 %v1289_v0  ;;  %374 = vadd.xlane.f32.xlu0 %v373_v7  ;;  %v928_v16 = vld [vmem:[%s1594_s3] ss:$0 sm:$0xff]  ;;  %v376_v26 = vrot.slane %v373_v7, 4  ;;  %s746_s18 = scalar_lea.sflag [#allocation12], %s1494_s17  ;;  %s1175_s20 = scalar_lea.vmem %s772_s4, 16 }
  0x7d   : > { %954 = vmatpush3.msra.mxu0 %v423_v2  ;;  %p1176_p12 = scmp.ne.s32.totalorder %s772_s4, %s1175_s20  ;;  %p1623_p7 = scmp.ne.s32.totalorder %s1614_s11, 0 }
  0x7e   : > { %955 = vmatprep.subr.mxu0 %v1289_v0  ;;  %v377_v27 = vadd.f32 %v376_v26, %v373_v7  ;;  %s1292_s16 = smov [#allocation11]  }
  0x7f   : > { %956 = vmatpush3.msra.mxu0 %v422_v3  ;;  %p1177_p9 = pnand %p1176_p12, %p1623_p7  ;;  %s1179_s19 = sshll.u32 %s1292_s16, 4  ;;  %s1180_s19 = int_to_ptr.vmem [resolvable:$false] %s1179_s19 }
  0x80   : > { %957 = vmatprep.subr.mxu0 %v1289_v0  ;;  %v378_v28 = vrot.slane %v377_v27, 2  ;;  %s1181_s22 = scalar_lea.vmem %s1180_s19, 32  ;;  %p1182_p5 = scmp.lt.s32.totalorder %s772_s4, %s1180_s19 }
  0x81   : > { %958 = vmatpush3.msra.mxu0 %v421_v4  ;;  %p1178_p13 = pneg %p1177_p9  ;;  %p1183_p1 = scmp.lt.s32.totalorder %s1181_s22, %s1175_s20 }
  0x82   : > { %960 = vmatmul.mubr.msk.f32.vlgmr.msra.gmra.mxu0 %vm426_vm1, %v371_v5  ;;  %978 = vmatprep.subr.mxu0 %v1289_v0  ;;  %v379_v29 = vadd.f32 %v378_v28, %v377_v27 }
  0x83   : > { %980 = vmatprep.mubr.msk.f32.mxu0 %vm1290_vm0, %v1289_v0  ;;  %p1184_p3 = por %p1183_p1, %p1182_p5 }
  0x84   : > { %v380_v30 = vrot.slane %v379_v29, 1 }
  0x85   : > { %p1185_p4 = pnand %p1184_p3, %p1178_p13 }
  0x86   : > { %v381_v31 = vadd.f32 %v380_v30, %v379_v29 }
 0x105   : > { %v375_v10 = vpop.xlane.xlu0 %374 }
 0x106   : > { %384 = vxpose.xlu0.b32.start.end [1/1] (short) (narrow) %v375_v10, 8  ;;  %v382_v15 = vadd.f32 1.0, %v375_v10 }
 0x108   : > { %1065 = vrcp.f32 %v382_v15 }
 0x115   : > { %v1066_v19 = vpop.eup %1065 }
 0x142   : > { %v496_v8 = vpop.f32.mrf.mxu0 }
 0x143   : > { %963 = vmatpush3.msra.mxu1 %v496_v8 }
 0x144   : > { %v961_v9 = vpop.f32.mrf.mxu0  ;;  %965 = vmatmul.mubr.msk.f32.vlgmr.msra.gmra.mxu1 %vm372_vm2, %v370_v6  ;;  %967 = vmatprep.subr.mxu1 %v1289_v0 }
 0x145   : > { %975 = vmatprep.mubr.msk.f32.mxu1 %vm1290_vm0, %v1289_v0  ;;  %968 = vmatpush3.msra.mxu1 %v585_v11 }
 0x146   : > { %969 = vmatprep.subr.mxu1 %v1289_v0 }
 0x147   : > { %970 = vmatpush3.msra.mxu1 %v584_v12 }
 0x148   : > { %971 = vmatprep.subr.mxu1 %v1289_v0 }
 0x149   : > { %972 = vmatpush3.msra.mxu1 %v583_v13 }
 0x14a   : > { %973 = vmatprep.subr.mxu1 %v1289_v0 }
 0x14b   : > { %974 = vmatpush3.msra.mxu1 %v582_v14 }
 0x182   : > { %v400_v32 = vpop.trf.xlu0 }
 0x183   : > { %v416_v33 = vadd.f32 %v400_v32, %v381_v31 }
 0x185   : > { %vm417_vm3 = vcmp.eq.f32.partialorder %v416_v33, 0.0 }
 0x186   : > { %v418_v35 = vsel %vm417_vm3, 1, %v1291_v34 }
 0x187   : > { %420 = vst.msk [vmem:[%s369_s12] sm:$0x1] %vm419_vm4, %v418_v35 }
 0x204   : > { %v569_v17 = vpop.f32.mrf.mxu1 }
 0x205   : > { %v570_v18 = vadd.f32 %v569_v17, %v496_v8 }
 0x206   : > { %v966_v20 = vpop.f32.mrf.mxu1 }
 0x207   : > { %v579_v21 = vadd.f32 %v928_v16, %v570_v18 }
 0x209   : > { %v580_v22 = vmul.f32 %v1066_v19, %v579_v21 }
 0x20b   : > { %v581_v23 = vmax.f32 %v580_v22, 0.0 }
 0x20d   : > { %976 = vmatmul.mubr.msk.f32.vlgmr.msra.gmra.mxu1 %vm426_vm1, %v581_v23 }
 0x2cd   : > { %v656_v24 = vpop.f32.mrf.mxu1 }
 0x2ce   : > { %979 = vmatpush3.msra.mxu0 %v656_v24 }
 0x2cf   : > { %v977_v25 = vpop.f32.mrf.mxu1  ;;  %981 = vmatmul.mubr.msk.f32.vlgmr.msra.gmra.mxu0 %vm372_vm2, %v370_v6 }
 0x2d0   : > { %1188 = shalt.err (!%p1185_p4)
}
 0x2d1   : > { %s1189_s9 = scalar_lea.hbm %s769_s14, 16  ;;  %s1193_s30 = scalar_lea.hbm %s1598_s7, 32 }
 0x2d2   : > { %p1190_p10 = scmp.ne.s32.totalorder %s769_s14, %s1189_s9  ;;  %p1194_p11 = scmp.lt.s32.totalorder %s769_s14, %s1598_s7 }
 0x2d3   : > { %p1195_p2 = scmp.lt.s32.totalorder %s1193_s30, %s1189_s9 }
 0x2d4   : > { %p1191_p0 = pnand %p1190_p10, %p1623_p7 }
 0x2d5   : > { %p1196_p6 = por %p1195_p2, %p1194_p11 }
 0x2d6   : > { %p1192_p8 = pneg %p1191_p0 }
 0x2d8   : > { %p1197_p12 = pnand %p1196_p6, %p1192_p8 }
 0x2da   : > { %1200 = shalt.err (!%p1197_p12)
}
 0x2db   : > { %996 = dma.vmem_to_hbm [thread:$0]  (%p1623_p7), %s772_s4, 16, %s769_s14, %s746_s18   ;;  %v931_v36 = vld [vmem:[%s1596_s5] ss:$0 sm:$0xff] }
 0x2dc   : > { %s933_s29 = sshll.u32 %s1355_s28, 7  ;;  %s363_s20 = scalar_lea.vmem [#allocation10], %s1497_s2 }
 0x2dd   : > { %s758_s16 = sshll.u32 %s363_s20, 4  ;;  %s756_s9 = scalar_lea.hbm %s1597_s6, %s933_s29  ;;  %s759_s16 = int_to_ptr.vmem [resolvable:$true] %s758_s16 }
 0x2de   : > { %s741_s4 = scalar_lea.sflag [#allocation4], %s1494_s17  ;;  %s1201_s14 = scalar_lea.vmem %s759_s16, 128 }
 0x2df   : > { %p1202_p9 = scmp.ne.s32.totalorder %s759_s16, %s1201_s14  ;;  %s1293_s18 = smov [#allocation10]  }
 0x2e0   : > { %s1205_s21 = sshll.u32 %s1293_s18, 4  ;;  %s1206_s21 = int_to_ptr.vmem [resolvable:$false] %s1205_s21 }
 0x2e1   : > { %p1203_p13 = pnand %p1202_p9, %p1623_p7  ;;  %s1207_s28 = scalar_lea.vmem %s1206_s21, 256 }
 0x2e2   : > { %p1208_p1 = scmp.lt.s32.totalorder %s759_s16, %s1206_s21  ;;  %p1209_p3 = scmp.lt.s32.totalorder %s1207_s28, %s1201_s14 }
 0x2e3   : > { %p1204_p5 = pneg %p1203_p13 }
 0x2e4   : > { %p1210_p4 = por %p1209_p3, %p1208_p1 }
 0x2e6   : > { %p1211_p10 = pnand %p1210_p4, %p1204_p5 }
 0x38f   : > { %v726_v37 = vpop.f32.mrf.mxu0 }
 0x390   : > { %v727_v38 = vadd.f32 %v726_v37, %v656_v24 }
 0x391   : > { %v982_v39 = vpop.f32.mrf.mxu0 }
 0x392   : > { %v736_v40 = vadd.f32 %v931_v36, %v727_v38 }
 0x394   : > { %v737_v41 = vmul.f32 %v1066_v19, %v736_v40 }
 0x396   : > { %v738_v42 = vmax.f32 %v737_v41, 0.0 }
 0x398   : > { %739 = vst.msk [vmem:[%s363_s20] sm:$0xff] %vm426_vm1, %v738_v42 }
 0x399   : > { %1214 = shalt.err (!%p1211_p10)
}
 0x39a   : > { %s1215_s2 = scalar_lea.hbm %s756_s9, 128  ;;  %s1219_s30 = scalar_lea.hbm %s1597_s6, 256 }
 0x39b   : > { %p1216_p0 = scmp.ne.s32.totalorder %s756_s9, %s1215_s2  ;;  %p1220_p2 = scmp.lt.s32.totalorder %s756_s9, %s1597_s6 }
 0x39c   : > { %p1221_p6 = scmp.lt.s32.totalorder %s1219_s30, %s1215_s2 }
 0x39d   : > { %p1217_p8 = pnand %p1216_p0, %p1623_p7 }
 0x39e   : > { %p1222_p12 = por %p1221_p6, %p1220_p2 }
 0x39f   : > { %p1218_p11 = pneg %p1217_p8 }
 0x3a1   : > { %p1223_p9 = pnand %p1222_p12, %p1218_p11 }
 0x3a3   : > { %1226 = shalt.err (!%p1223_p9)
}
 0x3a4   : > { %995 = dma.vmem_to_hbm [thread:$0]  (%p1623_p7), %s759_s16, 128, %s756_s9, %s741_s4  }
 0x3a5 PF: > { %s783_s13 = sand.u32 1, %s1269_s24   ;;  %p1624_p13 = scmp.ne.s32.totalorder %s1608_s8, 0 }
 0x3a6   : > { %p1625_p5 = scmp.ge.s32.totalorder %s1281_s27, 2  ;;  %s784_s15 = scalar_lea.sflag [#allocation4], %s783_s13 }
 0x3a8   : > { %p1014_p1 = pnand %p1625_p5, %p1624_p13 }
 0x3aa   : > { %p1015_p3 = pneg %p1014_p1 }
 0x3ac   : > { %1260 = dma.done.wait (%p1015_p3), %s784_s15, 128  }
 0x3ad   : > { %1262 = vsyncadd (%p1015_p3), %s784_s15, 4294967168  ;;  %s793_s29 = scalar_lea.sflag [#allocation12], %s783_s13 }
 0x3ae   : > { %1264 = dma.done.wait (%p1015_p3), %s793_s29, 16  }
 0x3af   : > { %1266 = vsyncadd (%p1015_p3), %s793_s29, 4294967280  ;;  %s1626_s20 = sld [smem:[#allocation19_spill]]  ;;  %p28_p7 = scmp.ge.s32.totalorder %s1406_s23, 4  }
 0x3b0   : > { %s1627_s26 = sld [smem:[#allocation20_spill]]  ;;  %s1628_s24 = smov %s1273_s25 }
 0x3b1   : > { %s1630_s27 = smov %s1406_s23  ;;  %30 = sbr.rel (!%p28_p7) target bundleno = 13 (0xd), region = 127 }
 0x3b5   : > { %s1629_s25 = smov %s1626_s20 }
 0x3b6   :  { %797 = vsyncpa [#allocation3], 1 }
 0x3b7   :  { %799 = vsyncpa [#allocation3 + $0x1], 1 }
 0x3b8   :  { %800 = vsyncpa [#allocation6], 1 }
 0x3b9   :  { %802 = vsyncpa [#allocation6 + $0x1], 1 }
 0x3ba   :  { %803 = vsyncpa [#allocation9], 1 }
 0x3bb   :  { %804 = vsyncpa [#allocation4], 1 }
 0x3bc   :  { %806 = vsyncpa [#allocation4 + $0x1], 1 }
 0x3bd   :  { %807 = vsyncpa [#allocation12], 1 }
 0x3be   :  { %809 = vsyncpa [#allocation12 + $0x1], 1 }

</bundles_post_ra>
